<compile_context>
chip_gen: v7x
topology: tpu7x:2x2x1
jax: 0.10.0
libtpu: 0.0.40
codegen_flags: <defaults>
</compile_context>

<pallas_src>
import jax
import jax.numpy as jnp
import numpy as np
from jax import lax
from jax.experimental import pallas as pl
from jax.experimental.pallas import tpu as pltpu


def _attack_embed_kernel(ids_ref, msk_ref, aidx_ref, attack_ref, w_ref,
                         out_ref, acc_ref):
    """One (b, d_tile) output tile, accumulated over V tiles (grid axis 2)."""
    v = pl.program_id(2)
    nv = pl.num_programs(2)

    S = ids_ref.shape[1]
    tV = w_ref.shape[0]
    n_attack = attack_ref.shape[0]

    @pl.when(v == 0)
    def _():
        acc_ref[...] = jnp.zeros_like(acc_ref)

    ids = ids_ref[0]      # (S, 1) int32 token ids
    msk = msk_ref[0]      # (S, 1) int32 attack mask (0/1)
    aidx = aidx_ref[0]    # (S, 1) int32 attack-row index per position

    # One-hot of input_ids restricted to this vocab tile, built directly in bf16.
    col = lax.broadcasted_iota(jnp.int32, (S, tV), 1) + v * tV
    x = (col == ids).astype(jnp.bfloat16)                         # (S, tV)

    # Fold the attack scatter in with VPU selects (n_attack is tiny; no MXU, no
    # (S, V) attack_rows temporary). Masked positions take attack_param[aidx].
    for j in range(n_attack):
        take = (msk != 0) & (aidx == j)                           # (S, 1) bool
        x = jnp.where(take, attack_ref[j:j + 1, :], x)            # (S, tV) bf16

    # bf16 x bf16 -> f32 accumulate on the MXU.
    acc_ref[...] += jnp.dot(x, w_ref[...], preferred_element_type=jnp.float32)

    @pl.when(v == nv - 1)
    def _():
        out_ref[0] = acc_ref[...].astype(out_ref.dtype)           # lane-dense (S, tD)


def _pick_tile(n, target, align=128):
    """Largest multiple of `align` that divides n and is <= target, else full n."""
    if n <= target:
        return n
    t = (target // align) * align
    while t >= align:
        if n % t == 0:
            return t
        t -= align
    return n


def adversarial_attack_forward(input_ids, attack_mask, attack_param, emb_weight,
                               *, tv=512, td=512):
    """input_ids (B,S) int32, attack_mask (B,S) bool,
       attack_param (n_attack, V) f32, emb_weight (V, D) f32."""
    B, S = input_ids.shape
    V, D = emb_weight.shape
    n_attack = attack_param.shape[0]

    tV = _pick_tile(V, tv)
    tD = _pick_tile(D, td)
    nV = V // tV
    nD = D // tD

    # Glue: j-th True position of each row uses attack row (j % n_attack) (torch .tile).
    pos = jnp.cumsum(attack_mask.astype(jnp.int32), axis=1) - 1
    aidx = jnp.where(attack_mask, pos % n_attack, 0).astype(jnp.int32)

    # out_ids without any O(S*V) work:
    #   argmax(one_hot(id)) == id, argmax(attack row) is n_attack scalars.
    attack_tok = jnp.argmax(attack_param, axis=-1).astype(jnp.int32)   # (n_attack,)
    out_ids = jnp.where(attack_mask, attack_tok[aidx], input_ids.astype(jnp.int32))

    ids3 = input_ids.astype(jnp.int32)[..., None]      # (B, S, 1)
    msk3 = attack_mask.astype(jnp.int32)[..., None]    # (B, S, 1)
    aidx3 = aidx[..., None]                            # (B, S, 1)

    # bf16 inputs to the MXU (exact for 0/1 one-hots; halves weight DMA bytes).
    attack_bf16 = attack_param.astype(jnp.bfloat16)
    w_bf16 = emb_weight.astype(jnp.bfloat16)

    out_emb = pl.pallas_call(
        _attack_embed_kernel,
        out_shape=jax.ShapeDtypeStruct((B, S, D), jnp.float32),
        grid_spec=pltpu.PrefetchScalarGridSpec(
            num_scalar_prefetch=0,
            grid=(B, nD, nV),                      # V reduction last ("arbitrary")
            in_specs=[
                pl.BlockSpec((1, S, 1), lambda b, d, v: (b, 0, 0)),          # ids
                pl.BlockSpec((1, S, 1), lambda b, d, v: (b, 0, 0)),          # mask
                pl.BlockSpec((1, S, 1), lambda b, d, v: (b, 0, 0)),          # attack idx
                pl.BlockSpec((n_attack, tV), lambda b, d, v: (0, v)),        # attack rows
                pl.BlockSpec((tV, tD), lambda b, d, v: (v, d)),              # weight tile
            ],
            out_specs=pl.BlockSpec((1, S, tD), lambda b, d, v: (b, 0, d)),   # resident over v
            scratch_shapes=[pltpu.VMEM((S, tD), jnp.float32)],               # f32 accumulator
        ),
        compiler_params=pltpu.CompilerParams(
            dimension_semantics=("parallel", "parallel", "arbitrary"),
            vmem_limit_bytes=32 * 1024 * 1024,     # safe on v5e/v6e/v7x; tiles are small
        ),
    )(ids3, msk3, aidx3, attack_bf16, w_bf16)

    return out_ids, out_emb


def _reference(input_ids, attack_mask, attack_param, emb_weight):
    """Pure-JAX reference of the same forward semantics (f32 throughout)."""
    V, D = emb_weight.shape
    n_attack = attack_param.shape[0]
    onehot = jax.nn.one_hot(input_ids, V, dtype=jnp.float32)
    pos = jnp.cumsum(attack_mask.astype(jnp.int32), axis=1) - 1
    aidx = jnp.where(attack_mask, pos % n_attack, 0)
    attack_rows = attack_param[aidx]
    x = jnp.where(attack_mask[..., None], attack_rows, onehot)
    ids = jnp.argmax(x, axis=-1).astype(jnp.int32)
    emb = jnp.einsum("bsv,vd->bsd", x, emb_weight)
    return ids, emb


if __name__ == "__main__":
    B, S, V, D, N_ATTACK = 2, 8, 256, 256, 2

    key = jax.random.PRNGKey(0)
    k_w, k_ids = jax.random.split(key)

    # Deterministic "embedding" weights (V, D) and input token ids.
    emb_weight = jax.random.normal(k_w, (V, D), dtype=jnp.float32)
    input_ids = jax.random.randint(k_ids, (B, S), 0, V, dtype=jnp.int32)

    # Attack parameters: one-hot rows of chosen attack token ids (dim=0 init path).
    attack_token_ids = jnp.array([7, 42], dtype=jnp.int32)
    attack_param = jax.nn.one_hot(attack_token_ids, V, dtype=jnp.float32)  # (n_attack, V)

    # Attack mask: exactly n_attack True positions per batch row.
    mask_np = np.zeros((B, S), dtype=bool)
    mask_np[0, 2:4] = True
    mask_np[1, 5:7] = True
    attack_mask = jnp.asarray(mask_np)

    # Use 128-tiles so the demo exercises multiple V (reduction) and D (parallel) tiles.
    out_ids, out_emb = adversarial_attack_forward(
        input_ids, attack_mask, attack_param, emb_weight, tv=128, td=128)
    jax.block_until_ready((out_ids, out_emb))

    ref_ids, ref_emb = _reference(input_ids, attack_mask, attack_param, emb_weight)
    np.testing.assert_array_equal(np.asarray(out_ids), np.asarray(ref_ids))
    # Kernel matmul runs in bf16 (f32 accumulate) -> loosen tolerance vs f32 reference.
    np.testing.assert_allclose(np.asarray(out_emb), np.asarray(ref_emb),
                               rtol=2e-2, atol=2e-2)

    print("KERNEL_OK")
</pallas_src>

<mosaic_0001>
module attributes {stable_mosaic.version = 11 : i64} {
  func.func @_attack_embed_kernel(%arg0: i32, %arg1: i32, %arg2: i32, %arg3: memref<1x8x1xi32, #tpu.memory_space<vmem>>, %arg4: memref<1x8x1xi32, #tpu.memory_space<vmem>>, %arg5: memref<1x8x1xi32, #tpu.memory_space<vmem>>, %arg6: memref<2x128xbf16, #tpu.memory_space<vmem>>, %arg7: memref<128x128xbf16, #tpu.memory_space<vmem>>, %arg8: memref<1x8x128xf32, #tpu.memory_space<vmem>>, %arg9: memref<8x128xf32, #tpu.memory_space<vmem>>) attributes {dimension_semantics = [#tpu.dimension_semantics<parallel>, #tpu.dimension_semantics<parallel>, #tpu.dimension_semantics<arbitrary>], iteration_bounds = array<i64: 2, 2, 2>, scalar_prefetch = 0 : i64, scratch_operands = 1 : i64, tpu.core_type = #tpu.core_type<tc>, window_params = [{transform_indices = @transform_0, window_bounds = array<i64: 1, 8, 1>}, {transform_indices = @transform_1, window_bounds = array<i64: 1, 8, 1>}, {transform_indices = @transform_2, window_bounds = array<i64: 1, 8, 1>}, {transform_indices = @transform_3, window_bounds = array<i64: 2, 128>}, {transform_indices = @transform_4, window_bounds = array<i64: 128, 128>}, {transform_indices = @transform_5, window_bounds = array<i64: 1, 8, 128>}]} {
    %c0_i32 = arith.constant 0 : i32
    %0 = arith.cmpi eq, %arg2, %c0_i32 : i32
    %1 = arith.extui %0 : i1 to i32
    %c0_i32_0 = arith.constant 0 : i32
    %2 = arith.cmpi ne, %1, %c0_i32_0 : i32
    scf.if %2 {
      %cst_23 = arith.constant 0.000000e+00 : f32
      %48 = vector.broadcast %cst_23 : f32 to vector<8x128xf32>
      %c0_24 = arith.constant 0 : index
      %c0_25 = arith.constant 0 : index
      %49 = vector.load %arg9[%c0_24, %c0_25] : memref<8x128xf32, #tpu.memory_space<vmem>>, vector<8x128xf32>
      tpu.vector_store %arg9[%c0_24, %c0_25], %48 {strides = array<i32>} : memref<8x128xf32, #tpu.memory_space<vmem>>, vector<8x128xf32>,
    } else {
    }
    %c0 = arith.constant 0 : index
    %c0_1 = arith.constant 0 : index
    %c0_2 = arith.constant 0 : index
    %3 = vector.load %arg3[%c0, %c0_1, %c0_2] : memref<1x8x1xi32, #tpu.memory_space<vmem>>, vector<1x8x1xi32>
    %4 = vector.shape_cast %3 : vector<1x8x1xi32> to vector<8x1xi32>
    %c0_3 = arith.constant 0 : index
    %c0_4 = arith.constant 0 : index
    %c0_5 = arith.constant 0 : index
    %5 = vector.load %arg4[%c0_3, %c0_4, %c0_5] : memref<1x8x1xi32, #tpu.memory_space<vmem>>, vector<1x8x1xi32>
    %6 = vector.shape_cast %5 : vector<1x8x1xi32> to vector<8x1xi32>
    %c0_6 = arith.constant 0 : index
    %c0_7 = arith.constant 0 : index
    %c0_8 = arith.constant 0 : index
    %7 = vector.load %arg5[%c0_6, %c0_7, %c0_8] : memref<1x8x1xi32, #tpu.memory_space<vmem>>, vector<1x8x1xi32>
    %8 = vector.shape_cast %7 : vector<1x8x1xi32> to vector<8x1xi32>
    %9 = tpu.iota {dimensions = array<i32: 1>} : vector<8x128xi32>
    %c128_i32 = arith.constant 128 : i32
    %10 = arith.muli %arg2, %c128_i32 : i32
    %11 = vector.broadcast %10 : i32 to vector<8x128xi32>
    %12 = arith.addi %9, %11 : vector<8x128xi32>
    %13 = vector.broadcast %4 : vector<8x1xi32> to vector<8x128xi32>
    %14 = arith.cmpi eq, %12, %13 : vector<8x128xi32>
    %15 = arith.extui %14 : vector<8x128xi1> to vector<8x128xi32>
    %16 = arith.sitofp %15 : vector<8x128xi32> to vector<8x128xf32>
    %17 = arith.truncf %16 : vector<8x128xf32> to vector<8x128xbf16>
    %c0_i32_9 = arith.constant 0 : i32
    %18 = vector.broadcast %c0_i32_9 : i32 to vector<8x1xi32>
    %19 = arith.cmpi ne, %6, %18 : vector<8x1xi32>
    %c0_i32_10 = arith.constant 0 : i32
    %20 = vector.broadcast %c0_i32_10 : i32 to vector<8x1xi32>
    %21 = arith.cmpi eq, %8, %20 : vector<8x1xi32>
    %22 = arith.andi %19, %21 : vector<8x1xi1>
    %c0_11 = arith.constant 0 : index
    %c0_12 = arith.constant 0 : index
    %23 = vector.load %arg6[%c0_11, %c0_12] : memref<2x128xbf16, #tpu.memory_space<vmem>>, vector<1x128xbf16>
    %24 = vector.shape_cast %22 : vector<8x1xi1> to vector<8x1xi1>
    %25 = vector.broadcast %24 : vector<8x1xi1> to vector<8x128xi1>
    %26 = vector.shape_cast %23 : vector<1x128xbf16> to vector<1x128xbf16>
    %27 = vector.broadcast %26 : vector<1x128xbf16> to vector<8x128xbf16>
    %28 = arith.select %25, %27, %17 : vector<8x128xi1>, vector<8x128xbf16>
    %c0_i32_13 = arith.constant 0 : i32
    %29 = vector.broadcast %c0_i32_13 : i32 to vector<8x1xi32>
    %30 = arith.cmpi ne, %6, %29 : vector<8x1xi32>
    %c1_i32 = arith.constant 1 : i32
    %31 = vector.broadcast %c1_i32 : i32 to vector<8x1xi32>
    %32 = arith.cmpi eq, %8, %31 : vector<8x1xi32>
    %33 = arith.andi %30, %32 : vector<8x1xi1>
    %c1 = arith.constant 1 : index
    %c0_14 = arith.constant 0 : index
    %34 = vector.load %arg6[%c1, %c0_14] : memref<2x128xbf16, #tpu.memory_space<vmem>>, vector<1x128xbf16>
    %35 = vector.shape_cast %33 : vector<8x1xi1> to vector<8x1xi1>
    %36 = vector.broadcast %35 : vector<8x1xi1> to vector<8x128xi1>
    %37 = vector.shape_cast %34 : vector<1x128xbf16> to vector<1x128xbf16>
    %38 = vector.broadcast %37 : vector<1x128xbf16> to vector<8x128xbf16>
    %39 = arith.select %36, %38, %28 : vector<8x128xi1>, vector<8x128xbf16>
    %c0_15 = arith.constant 0 : index
    %c0_16 = arith.constant 0 : index
    %40 = vector.load %arg9[%c0_15, %c0_16] : memref<8x128xf32, #tpu.memory_space<vmem>>, vector<8x128xf32>
    %c0_17 = arith.constant 0 : index
    %c0_18 = arith.constant 0 : index
    %41 = vector.load %arg7[%c0_17, %c0_18] : memref<128x128xbf16, #tpu.memory_space<vmem>>, vector<128x128xbf16>
    %cst = arith.constant dense<0.000000e+00> : vector<8x128xf32>
    %42 = tpu.matmul %39, %41, %cst {dimension_numbers = #tpu.dot_dimension_numbers<[1], [0], [0], [1], [0, 0, 1, 1], [], []>} : vector<8x128xbf16>, vector<128x128xbf16>, vector<8x128xf32> -> vector<8x128xf32>
    %43 = arith.addf %40, %42 : vector<8x128xf32>
    %c0_19 = arith.constant 0 : index
    %c0_20 = arith.constant 0 : index
    %44 = vector.load %arg9[%c0_19, %c0_20] : memref<8x128xf32, #tpu.memory_space<vmem>>, vector<8x128xf32>
    tpu.vector_store %arg9[%c0_19, %c0_20], %43 {strides = array<i32>} : memref<8x128xf32, #tpu.memory_space<vmem>>, vector<8x128xf32>,
    %c1_i32_21 = arith.constant 1 : i32
    %45 = arith.cmpi eq, %arg2, %c1_i32_21 : i32
    %46 = arith.extui %45 : i1 to i32
    %c0_i32_22 = arith.constant 0 : i32
    %47 = arith.cmpi ne, %46, %c0_i32_22 : i32
    scf.if %47 {
      %c0_23 = arith.constant 0 : index
      %c0_24 = arith.constant 0 : index
      %48 = vector.load %arg9[%c0_23, %c0_24] : memref<8x128xf32, #tpu.memory_space<vmem>>, vector<8x128xf32>
      %c0_25 = arith.constant 0 : index
      %c0_26 = arith.constant 0 : index
      %c0_27 = arith.constant 0 : index
      %49 = vector.load %arg8[%c0_25, %c0_26, %c0_27] : memref<1x8x128xf32, #tpu.memory_space<vmem>>, vector<1x8x128xf32>
      %50 = vector.shape_cast %49 : vector<1x8x128xf32> to vector<8x128xf32>
      %51 = vector.shape_cast %48 : vector<8x128xf32> to vector<1x8x128xf32>
      tpu.vector_store %arg8[%c0_25, %c0_26, %c0_27], %51 {strides = array<i32>} : memref<1x8x128xf32, #tpu.memory_space<vmem>>, vector<1x8x128xf32>,
    } else {
    }
    return
  }
  func.func @transform_0(%arg0: i32, %arg1: i32, %arg2: i32) -> (i32, i32, i32) {
    %c0_i32 = arith.constant 0 : i32
    %c0_i32_0 = arith.constant 0 : i32
    %c0_i32_1 = arith.constant 0 : i32
    return %arg0, %c0_i32, %c0_i32_0 : i32, i32, i32
  }
  func.func @transform_1(%arg0: i32, %arg1: i32, %arg2: i32) -> (i32, i32, i32) {
    %c0_i32 = arith.constant 0 : i32
    %c0_i32_0 = arith.constant 0 : i32
    %c0_i32_1 = arith.constant 0 : i32
    return %arg0, %c0_i32, %c0_i32_0 : i32, i32, i32
  }
  func.func @transform_2(%arg0: i32, %arg1: i32, %arg2: i32) -> (i32, i32, i32) {
    %c0_i32 = arith.constant 0 : i32
    %c0_i32_0 = arith.constant 0 : i32
    %c0_i32_1 = arith.constant 0 : i32
    return %arg0, %c0_i32, %c0_i32_0 : i32, i32, i32
  }
  func.func @transform_3(%arg0: i32, %arg1: i32, %arg2: i32) -> (i32, i32) {
    %c0_i32 = arith.constant 0 : i32
    %c0_i32_0 = arith.constant 0 : i32
    return %c0_i32, %arg2 : i32, i32
  }
  func.func @transform_4(%arg0: i32, %arg1: i32, %arg2: i32) -> (i32, i32) {
    %c0_i32 = arith.constant 0 : i32
    return %arg2, %arg1 : i32, i32
  }
  func.func @transform_5(%arg0: i32, %arg1: i32, %arg2: i32) -> (i32, i32, i32) {
    %c0_i32 = arith.constant 0 : i32
    %c0_i32_0 = arith.constant 0 : i32
    return %arg0, %c0_i32, %arg1 : i32, i32, i32
  }
}

</mosaic_0001>

<bundles_post_ra>
// kernel: tpu_custom_call.1
= control target key start
LH: loop header
LB: loop body
LE: loop exit
PB: predicated region body
PF: predicated region fallthrough
CT: control target
= control target key end

     0   :  { %s1355_s0 = inlined_call_operand.vmem [shape: s32[2,8,1], index: 0, kind: input, shape index: {}]   ;;  %s1356_s1 = inlined_call_operand.vmem [shape: s32[2,8,1], index: 1, kind: input, shape index: {}]   ;;  %s1357_s2 = inlined_call_operand.vmem [shape: s32[2,8,1], index: 2, kind: input, shape index: {}]   ;;  %s1358_s3 = inlined_call_operand.vmem [shape: bf16[2,256], index: 3, kind: input, shape index: {}]   ;;  %s1359_s4 = inlined_call_operand.hbm [shape: bf16[256,256], index: 4, kind: input, shape index: {}]   ;;  %s1360_s5 = inlined_call_operand.hbm [shape: f32[2,8,256], index: 5, kind: output, shape index: {}]  }
   0x1   :  { %1374 = sst [smem:[#allocation19_spill]] %s1359_s4 }
   0x2   :  { %1375 = sst [smem:[#allocation20_spill]] %s1360_s5 }
   0x3   :  { %10 = vsyncpa [#allocation4], 0 }
   0x4   :  { %12 = vsyncpa [#allocation4 + $0x1], 0 }
   0x5   :  { %13 = vsyncpa [#allocation5], 0 }
   0x6   :  { %15 = vsyncpa [#allocation5 + $0x1], 0  ;;  %s1059_s18 = smov 0   ;;  %s1061_s19 = smov 0  }
   0x7   :  { %s1063_s20 = smov 0   ;;  %s1065_s21 = smov 0  }
   0x8   :  { %s1067_s22 = smov 0   ;;  %s1069_s23 = smov 0  }
   0x9   :  { %s1071_s24 = smov 0   ;;  %s1073_s25 = smov 0  }
   0xa   :  { %s1075_s26 = smov 0   ;;  %s1077_s27 = smov 0  }
   0xb   :  { %s1079_s28 = smov 0   ;;  %s1081_s29 = smov 0  }
   0xc   :  { %s1083_s30 = smov 0  }
   0xd LB: > { %1376 = sst [smem:[#allocation9_spill]] %s970_s18  ;;  %s1361_s6 = sadd.s32 4294967295, %s1018_s30   ;;  %s1018_s30 = sphi %s1083_s30, %s21_s30   ;;  %s1014_s29 = sphi %s1081_s29, %s1409_s29   ;;  %s1010_s28 = sphi %s1079_s28, %s1408_s28   ;;  %s1006_s27 = sphi %s1077_s27, %s1407_s27   ;;  %s1002_s26 = sphi %s1075_s26, %s1406_s26   ;;  %s998_s25 = sphi %s1073_s25, %s1405_s25   ;;  %s994_s24 = sphi %s1071_s24, %s1404_s24   ;;  %s990_s23 = sphi %s1069_s23, %s1403_s23   ;;  %s986_s22 = sphi %s1067_s22, %s1402_s22   ;;  %s982_s21 = sphi %s1065_s21, %s1401_s21   ;;  %s978_s20 = sphi %s1063_s20, %s1412_s20   ;;  %s974_s19 = sphi %s1061_s19, %s1411_s19   ;;  %s970_s18 = sphi %s1059_s18, %s1410_s18  }
   0xe   : > { %1377 = sst [smem:[#allocation10_spill]] %s986_s22  ;;  %s33_s8 = sadd.s32 1, %s1006_s27 }
   0xf   : > { %1378 = sst [smem:[#allocation11_spill]] %s990_s23  ;;  %s36_s9 = sadd.s32 1, %s1010_s28 }
  0x10   : > { %1379 = sst [smem:[#allocation12_spill]] %s1006_s27  ;;  %p34_p0 = scmp.ge.s32.totalorder %s33_s8, 2 }
  0x11   : > { %1380 = sst [smem:[#allocation13_spill]] %s1010_s28  ;;  %s40_s10 = sadd.s32 1, %s1014_s29 }
  0x12   : > { %1381 = sst [smem:[#allocation14_spill]] %s1014_s29  ;;  %s153_s11 = sadd.s32 1, %s990_s23 }
  0x13   : > { %p160_p1 = scmp.ne.s32.totalorder %s990_s23, %s986_s22  ;;  %s1414_s8 = smov (%p34_p0, %s33_s8), 0 }
  0x14   : > { %1382 = sst [smem:[#allocation15_spill]] %s1414_s8  ;;  %s1416_s9 = smov (!%p34_p0, %s36_s9), %s1010_s28 }
  0x15   : > { %s148_s12 = ssub.s32 %s1006_s27, %s1414_s8  ;;  %p161_p2 = scmp.eq.s32.totalorder %s1018_s30, 0 }
  0x16   : > { %p38_p3 = scmp.ge.s32.totalorder %s1416_s9, 2  ;;  %p166_p4 = scmp.ne.s32.totalorder %s986_s22, %s982_s21 }
  0x17   : > { %p1140_p5 = por %p161_p2, %p160_p1  ;;  %p167_p6 = scmp.eq.s32.totalorder %s1361_s6, 0 }
  0x18   : > { %s1418_s9 = smov (%p38_p3, %s1416_s9), 0  ;;  %s1420_s10 = smov (!%p38_p3, %s40_s10), %s1014_s29 }
  0x19   : > { %1384 = sst [smem:[#allocation16_spill]] %s1418_s9  ;;  %s149_s14 = ssub.s32 %s1010_s28, %s1418_s9 }
  0x1a   : > { %p1151_p7 = por %p167_p6, %p166_p4  ;;  %p42_p8 = scmp.ge.s32.totalorder %s1420_s10, 2 }
  0x1b   : > { %s150_s16 = sor.u32 %s149_s14, %s148_s12  ;;  %s181_s17 = sadd.s32 1, %s978_s20 }
  0x1c   : > { %p151_p9 = scmp.eq.s32.totalorder %s150_s16, 0  ;;  %s1422_s10 = smov (%p42_p8, %s1420_s10), 0 }
  0x1d   : > { %1386 = sst [smem:[#allocation17_spill]] %s1422_s10  ;;  %s176_s7 = ssub.s32 %s1014_s29, %s1422_s10 }
  0x1e   : > { %s1159_s21 = scalar_select %p151_p9, %s990_s23, %s153_s11  }
  0x1f   : > { %p191_p10 = scmp.ne.s32.totalorder %s978_s20, %s974_s19  ;;  %s178_s6 = sor.u32 %s176_s7, %s149_s14 }
  0x20   : > { %1387 = sst [smem:[#allocation18_spill]] %s1159_s21  ;;  %s1388_s9 = sadd.s32 4294967295, %s1018_s30  }
  0x21   : > { %p192_p11 = scmp.eq.s32.totalorder %s1388_s9, 7  ;;  %p179_p12 = scmp.eq.s32.totalorder %s178_s6, 0 }
  0x22   : > { %p197_p13 = scmp.ne.s32.totalorder %s974_s19, %s970_s18  ;;  %s1390_s16 = sadd.s32 4294967294, %s1018_s30  }
  0x23   : > { %p1169_p0 = por %p192_p11, %p191_p10  ;;  %p198_p1 = scmp.eq.s32.totalorder %s1390_s16, 7 }
  0x24   : > { %s1176_s8 = scalar_select %p179_p12, %s978_s20, %s181_s17  }
  0x25   : > { %s1389_s12 = scalar_select %p1169_p0, 1, 0 }
  0x26   : > { %p1178_p2 = por %p198_p1, %p197_p13  ;;  %p727_p3 = scmp.lt.s32.totalorder %s1018_s30, 8 }
  0x27   : > { %s245_s11 = sand.u32 1, %s990_s23   ;;  %s685_s14 = sshll.u32 %s1006_s27, 5 }
  0x28   : > { %s1391_s5 = scalar_select %p1178_p2, 1, 0 }
  0x29   : > { %s658_s7 = sshll.u32 %s245_s11, 6  ;;  %s255_s9 = sadd.s32 %s1010_s28, %s685_s14 }
  0x2a   : > { %s249_s6 = scalar_lea.vmem [#allocation3], %s658_s7  ;;  %s661_s29 = sshll.u32 %s255_s9, 6 }
  0x2b   : > { %s258_s10 = sshll.u32 %s249_s6, 4  ;;  %s1392_s4 = sld [smem:[#allocation19_spill]]  ;;  %s1186_s10 = int_to_ptr.vmem [resolvable:$true] %s258_s10 }
  0x2c   : > { %p1195_p4 = pnand %p727_p3, %p1140_p5  ;;  %s1199_s7 = scalar_lea.sflag [#allocation4], %s245_s11 }
  0x2e   : > { %p852_p8 = pneg %p1195_p4 }
  0x31   : > { %s1191_s16 = scalar_lea.hbm %s1392_s4, %s661_s29  ;;  %s855_s13 = scalar_lea.hbm %s1392_s4, 4096 }
  0x32   : > { %s850_s14 = scalar_lea.hbm %s1191_s16, 1024  ;;  %p856_p5 = scmp.lt.u32.totalorder %s1191_s16, %s1392_s4 }
  0x33   : > { %p851_p6 = scmp.ne.s32.totalorder %s1191_s16, %s850_s14  ;;  %p857_p11 = scmp.lt.u32.totalorder %s855_s13, %s850_s14 }
  0x34   : > { %p859_p13 = scmp.lt.u32.totalorder %s850_s14, %s1191_s16 }
  0x35   : > { %p853_p9 = pnand %p852_p8, %p851_p6  ;;  %p858_p12 = por %p857_p11, %p856_p5 }
  0x37   : > { %p854_p10 = pneg %p853_p9  ;;  %p860_p1 = por %p859_p13, %p858_p12 }
  0x39   : > { %p861_p3 = pnand %p860_p1, %p854_p10 }
  0x3b   : > { %864 = shalt.err (!%p861_p3)
}
  0x3c   : > { %s865_s11 = scalar_lea.vmem %s1186_s10, 1024  ;;  %s1020_s6 = smov [#allocation3]  }
  0x3d   : > { %p866_p6 = scmp.ne.s32.totalorder %s1186_s10, %s865_s11  ;;  %s870_s18 = sshll.u32 %s1020_s6, 4  ;;  %s871_s18 = int_to_ptr.vmem [resolvable:$false] %s870_s18 }
  0x3e   : > { %s872_s29 = scalar_lea.vmem %s871_s18, 2048  ;;  %p873_p0 = scmp.lt.s32.totalorder %s1186_s10, %s871_s18 }
  0x3f   : > { %p868_p9 = pnand %p866_p6, %p852_p8  ;;  %p874_p5 = scmp.lt.s32.totalorder %s872_s29, %s865_s11 }
  0x41   : > { %p869_p2 = pneg %p868_p9  ;;  %p875_p11 = por %p874_p5, %p873_p0 }
  0x43   : > { %p876_p12 = pnand %p875_p11, %p869_p2 }
  0x45   : > { %879 = shalt.err (!%p876_p12)
}
  0x46   : > { %s1021_s14 = smov 128   ;;  %s1022_s13 = smov 64  }
  0x47   : > { %s1023_s21 = smov 4   ;;  %p662_p8 = scmp.ge.s32.totalorder %s1018_s30, 1 }
  0x48   : > { %722 = dma.hbm_to_vmem [thread:$0]  (!%p1195_p4), %s1191_s16, 1024, %s1186_s10, %s1199_s7, %s1021_s14, %s1022_s13, %s1023_s21  }
  0x49   : > { %p266_p10 = scmp.lt.s32.totalorder %s1018_s30, 9 }
  0x4b   : > { %p267_p13 = pnand %p662_p8, %p266_p10 }
  0x4c   : > { %s272_s9 = sand.u32 (!%p267_p13), 1, %s986_s22  }
  0x4d   : > { %270 = sbr.rel (%p267_p13) target bundleno = 490 (0x1ea), region = 40  ;;  %s663_s11 = sshll.u32 (!%p267_p13), %s272_s9, 6 }
  0x4e   : > { %s273_s6 = scalar_lea.sflag (!%p267_p13), [#allocation4], %s272_s9  ;;  %s1230_s18 = scalar_lea.vmem (!%p267_p13), [#allocation3], %s663_s11 }
  0x54   : > { %961 = dma.done.wait (%p1151_p7), %s273_s6, 1024  }
  0x55   : > { %963 = vsyncadd (%p1151_p7), %s273_s6, 4294966272  ;;  %s1369_s10 = sand.u32 1, %s974_s19   ;;  %p318_p0 = scmp.lt.s32.totalorder %s1002_s26, 1 }
  0x56   : > { %s1240_s16 = sshll.u32 %s1369_s10, 3  ;;  %p330_p2 = scmp.lt.s32.totalorder %s994_s24, 1 }
  0x57   : > { %s319_s17 = scalar_select %p318_p0, %s1002_s26, 1 }
  0x58   : > { %s1245_s7 = scalar_select %p330_p2, %s994_s24, 1 }
  0x59   : > { %s665_s29 = sshll.u32 %s319_s17, 3  ;;  %s317_s22 = scalar_lea.vmem [#allocation6], %s1240_s16 }
  0x5a   : > { %s321_s13 = scalar_lea.vmem %s1355_s0, %s665_s29  ;;  %s325_s11 = scalar_lea.vmem %s1356_s1, %s665_s29 }
  0x5b   : > { %s329_s10 = scalar_lea.vmem %s1357_s2, %s665_s29  ;;  %s332_s23 = scalar_lea.vmem %s1358_s3, %s1245_s7 }
  0x5c   : > { %p668_p7 = scmp.ne.s32.totalorder %s994_s24, 0 }
  0x5d   : > { %v1024_v0 = vmov (!%p668_p7), 0.0  }
  0x5e   : > { %338 = sbr.rel (%p668_p7) target bundleno = 101 (0x65), region = 48  ;;  %339 = vst [vmem:[#allocation2] sm:$0xff] (!%p668_p7), %v1024_v0 }
  0x65 PF: > { %v340_v1 = vld [vmem:[%s321_s13] sm:$0xff]  ;;  %v1025_v4 = vmov 0   ;;  %v842_v5 = vld [vmem:[%s1230_s18] sm:$0xff]   ;;  %v1026_v6 = vmov 0.0   ;;  %v843_v8 = vld [vmem:[%s1230_s18 + $0x8] sm:$0xff]   ;;  %vm1027_vm5 = vmmov 0   ;;  %v343_v16 = vlaneseq }
  0x66   : > { %v341_v2 = vld [vmem:[%s325_s11] sm:$0xff]  ;;  %840 = vset.pattern.permute.xlu0 %v1025_v4  ;;  %841 = vset.pattern.permute.xlu1 %v1025_v4  ;;  %v844_v10 = vld [vmem:[%s1230_s18 + $0x10] sm:$0xff]   ;;  %v846_v12 = vld [vmem:[%s1230_s18 + $0x20] sm:$0xff]   ;;  %s669_s4 = sshll.u32 %s994_s24, 7  ;;  %p679_p4 = scmp.ne.s32.totalorder %s994_s24, 1 }
  0x67   : > { %v342_v3 = vld [vmem:[%s329_s10] sm:$0xff]  ;;  %vm355_vm0 = vcmp.ne.s32.totalorder %v341_v2, 0  ;;  %349 = vperm.xlu0 %840, %v340_v1   ;;  %695 = vmatprep.subr.bf16.mxu0 %v1026_v6  ;;  %v847_v13 = vld [vmem:[%s1230_s18 + $0x28] sm:$0xff]   ;;  %v848_v14 = vld [vmem:[%s1230_s18 + $0x30] sm:$0xff]   ;;  %v344_v17 = vand.u32 127, %v343_v16  ;;  %v346_v19 = vstv %s669_s4  ;;  %v368_v20 = vshrl.u32 %v343_v16, 7 }
  0x68   : > { %vm356_vm1 = vcmp.eq.s32.totalorder %v342_v3, 0  ;;  %vm373_vm2 = vcmp.eq.s32.totalorder %v342_v3, 1  ;;  %696 = vmatpush3.bf16.msra.mxu0 %v842_v5  ;;  %711 = vmatprep.mubr.msk.bf16.mxu0 %vm1027_vm5, %v1026_v6  ;;  %v845_v11 = vld [vmem:[%s1230_s18 + $0x18] sm:$0xff]  }
  0x69   : > { %vm357_vm3 = vmand %vm355_vm0, %vm356_vm1  ;;  %697 = vmatprep.subr.bf16.mxu0 %v1026_v6  ;;  %v849_v15 = vld [vmem:[%s1230_s18 + $0x38] sm:$0xff]   ;;  %v347_v22 = vadd.s32 %v346_v19, %v344_v17  ;;  %v369_v24 = vsub.s32 0, %v368_v20 }
  0x6a   : > { %v359_v7 = vsel %vm357_vm3, 1, %v1025_v4  ;;  %vm374_vm4 = vmand %vm355_vm0, %vm373_vm2  ;;  %v358_v18 = vld [vmem:[%s332_s23] sm:$0x1] }
  0x6b   : > { %v375_v9 = vsel %vm374_vm4, 1, %v1025_v4  ;;  %361 = vperm.xlu0 %840, %v359_v7   ;;  %v380_v21 = vshrl.u32 %v358_v18, 16  ;;  %v365_v23 = vpack.i.b16 %v358_v18, %v358_v18  ;;  %v389_v35 = vld [vmem:[#allocation2] sm:$0xff] }
  0x6c   : > { %377 = vperm.xlu1 %841, %v375_v9   ;;  %698 = vmatpush3.bf16.msra.mxu0 %v843_v8 }
  0x6d   : > { %699 = vmatprep.subr.bf16.mxu0 %v1026_v6  ;;  %v381_v26 = vpack.i.b16 %v380_v21, %v380_v21  ;;  %v370_v28 = vrot.slane %v365_v23, %v369_v24 }
  0x6f   : > { %v386_v31 = vrot.slane %v381_v26, %v369_v24 }
  0x70   : > { %700 = vmatpush3.bf16.msra.mxu0 %v844_v10 }
  0x71   : > { %701 = vmatprep.subr.bf16.mxu0 %v1026_v6 }
  0x74   : > { %702 = vmatpush3.bf16.msra.mxu0 %v845_v11 }
  0x75   : > { %703 = vmatprep.subr.bf16.mxu0 %v1026_v6 }
  0x78   : > { %704 = vmatpush3.bf16.msra.mxu0 %v846_v12 }
  0x79   : > { %705 = vmatprep.subr.bf16.mxu0 %v1026_v6 }
  0x7c   : > { %706 = vmatpush3.bf16.msra.mxu0 %v847_v13 }
  0x7d   : > { %707 = vmatprep.subr.bf16.mxu0 %v1026_v6 }
  0x80   : > { %708 = vmatpush3.bf16.msra.mxu0 %v848_v14 }
  0x81   : > { %709 = vmatprep.subr.bf16.mxu0 %v1026_v6 }
  0x84   : > { %710 = vmatpush3.bf16.msra.mxu0 %v849_v15 }
  0xe6   : > { %v350_v25 = vpop.permute.xlu0 %349 }
  0xe7   : > { %vm351_vm6 = vcmp.eq.s32.totalorder %v347_v22, %v350_v25 }
  0xe8   : > { %v670_v27 = vsel %vm351_vm6, 1.0, %v1026_v6 }
  0xe9   : > { %v354_v32 = vpack.c.bf16 %v670_v27, %v670_v27 }
  0xea   : > { %v362_v30 = vpop.permute.xlu0 %361 }
  0xeb   : > { %v378_v29 = vpop.permute.xlu1 %377  ;;  %vm363_vm8 = vcmp.eq.s32.totalorder %v362_v30, 1 }
  0xec   : > { %vm379_vm7 = vcmp.eq.s32.totalorder %v378_v29, 1  ;;  %vm371_vm10 = vmpackc.low %vm363_vm8, %vm363_vm8 }
  0xed   : > { %vm387_vm9 = vmpackc.low %vm379_vm7, %vm379_vm7  ;;  %v372_v33 = vsel %vm371_vm10, %v370_v28, %v354_v32 }
  0xee   : > { %v388_v34 = vsel %vm387_vm9, %v386_v31, %v372_v33 }
  0xef   : > { %712 = vmatmul.mubr.bf16.vlgmr.msra.gmra.mrb[0].mxu0 %v388_v34 }
 0x1bf   : > { %499 = sbr.rel (%p679_p4) target bundleno = 462 (0x1ce), region = 52 }
 0x1c2   : > { %v488_v36 = vpop.f32.mrb[0].mxu0 }
 0x1c3   : > { %v494_v37 = vadd.f32 %v488_v36, %v389_v35  ;;  %v713_v38 = vpop.f32.mrb[1].mxu0 }
 0x1c4   : > { %v491_v39 = vpop.f32.mrb[2].mxu0 }
 0x1c5   : > { %495 = vst [vmem:[#allocation2] sm:$0xff] %v494_v37  ;;  %v714_v40 = vpop.f32.mrb[3].mxu0 }
 0x1cc   : > { %v500_v41 = vld [vmem:[#allocation2] sm:$0xff] }
 0x1cd   : > { %501 = vst [vmem:[%s317_s22] sm:$0xff] %v500_v41 }
 0x1ce PF: > { %s681_s23 = sshll.u32 %s1002_s26, 1  ;;  %s518_s10 = sshll.u32 %s317_s22, 4  ;;  %s1283_s10 = int_to_ptr.vmem [resolvable:$true] %s518_s10 }
 0x1cf   : > { %s514_s18 = sadd.s32 %s998_s25, %s681_s23  ;;  %s1394_s29 = sld [smem:[#allocation20_spill]] }
 0x1d0   : > { %s682_s17 = sshll.u32 %s514_s18, 7  ;;  %s1396_s13 = sand.u32 1, %s974_s19  }
 0x1d1   : > { %s503_s21 = scalar_lea.sflag [#allocation5], %s1396_s13  ;;  %s880_s9 = scalar_lea.vmem %s1283_s10, 128 }
 0x1d2   : > { %p881_p1 = scmp.ne.s32.totalorder %s1283_s10, %s880_s9  ;;  %p1397_p3 = scmp.ne.s32.totalorder %s1389_s12, 0 }
 0x1d3   : > { %s1028_s25 = smov [#allocation6]  }
 0x1d4   : > { %p882_p6 = pnand %p881_p1, %p1397_p3  ;;  %s884_s26 = sshll.u32 %s1028_s25, 4  ;;  %s885_s26 = int_to_ptr.vmem [resolvable:$false] %s884_s26 }
 0x1d5   : > { %s1395_s15 = smov %s1394_s29  ;;  %s516_s14 = scalar_lea.hbm %s1394_s29, %s682_s17 }
 0x1d6   : > { %p883_p9 = pneg %p882_p6  ;;  %s886_s22 = scalar_lea.vmem %s885_s26, 256 }
 0x1d7   : > { %p887_p5 = scmp.lt.s32.totalorder %s1283_s10, %s885_s26  ;;  %p888_p11 = scmp.lt.s32.totalorder %s886_s22, %s880_s9 }
 0x1d9   : > { %p889_p12 = por %p888_p11, %p887_p5 }
 0x1db   : > { %p890_p8 = pnand %p889_p12, %p883_p9 }
 0x1dd   : > { %893 = shalt.err (!%p890_p8)
}
 0x1de   : > { %s894_s16 = scalar_lea.hbm %s516_s14, 128  ;;  %s898_s4 = scalar_lea.hbm %s1395_s15, 512 }
 0x1df   : > { %p895_p10 = scmp.ne.s32.totalorder %s516_s14, %s894_s16  ;;  %p899_p2 = scmp.lt.u32.totalorder %s516_s14, %s1395_s15 }
 0x1e0   : > { %p900_p7 = scmp.lt.u32.totalorder %s898_s4, %s894_s16  ;;  %p902_p1 = scmp.lt.u32.totalorder %s894_s16, %s516_s14 }
 0x1e1   : > { %p896_p13 = pnand %p895_p10, %p1397_p3 }
 0x1e2   : > { %p901_p4 = por %p900_p7, %p899_p2 }
 0x1e3   : > { %p897_p0 = pneg %p896_p13 }
 0x1e4   : > { %p903_p6 = por %p902_p1, %p901_p4 }
 0x1e6   : > { %p904_p9 = pnand %p903_p6, %p897_p0 }
 0x1e8   : > { %907 = shalt.err (!%p904_p9)
}
 0x1e9   : > { %717 = dma.vmem_to_hbm [thread:$0]  (%p1397_p3), %s1283_s10, 128, %s516_s14, %s503_s21  }
 0x1ea PF: > { %s1398_s23 = sld [smem:[#allocation9_spill]]  ;;  %p728_p5 = scmp.ge.s32.totalorder %s1018_s30, 2 }
 0x1eb   : > { %p1399_p11 = scmp.ne.s32.totalorder %s1391_s5, 0 }
 0x1ed   : > { %p724_p12 = pnand %p728_p5, %p1399_p11 }
 0x1f0   : > { %s530_s18 = sand.u32 1, %s1398_s23  }
 0x1f1   : > { %s531_s17 = scalar_lea.sflag [#allocation5], %s530_s18 }
 0x1f2   : > { %965 = dma.done.wait (!%p724_p12), %s531_s17, 128  }
 0x1f3   : > { %967 = vsyncadd (!%p724_p12), %s531_s17, 4294967168  ;;  %s21_s30 = sadd.s32 1, %s1018_s30   ;;  %s1401_s21 = sld [smem:[#allocation10_spill]] }
 0x1f4   : > { %p1311_p8 = scmp.ge.s32.totalorder %s21_s30, 10   ;;  %s1402_s22 = sld [smem:[#allocation11_spill]] }
 0x1f5   : > { %s1403_s23 = sld [smem:[#allocation18_spill]]  ;;  %s1404_s24 = sld [smem:[#allocation12_spill]] }
 0x1f6   : > { %s1405_s25 = sld [smem:[#allocation13_spill]]  ;;  %s1406_s26 = sld [smem:[#allocation14_spill]] }
 0x1f7   : > { %s1407_s27 = sld [smem:[#allocation15_spill]]  ;;  %s1408_s28 = sld [smem:[#allocation16_spill]] }
 0x1f8   : > { %s1409_s29 = sld [smem:[#allocation17_spill]]  ;;  %s1410_s18 = smov %s974_s19 }
 0x1f9   : > { %s1411_s19 = smov %s978_s20  ;;  %s1412_s20 = smov %s1176_s8 }
 0x1fa   :  { %20 = sbr.rel (!%p1311_p8) target bundleno = 13 (0xd), region = 105 }
 0x201   :  { %536 = vsyncpa [#allocation4], 1 }
 0x202   :  { %538 = vsyncpa [#allocation4 + $0x1], 1 }
 0x203   :  { %539 = vsyncpa [#allocation5], 1 }
 0x204   :  { %541 = vsyncpa [#allocation5 + $0x1], 1 }

</bundles_post_ra>
